<compile_context>
chip_gen: v5e
topology: v5e:2x2
jax: 0.10.0
libtpu: 0.0.40
codegen_flags: <defaults>
</compile_context>

<pallas_src>
import math
import functools

import jax
import jax.numpy as jnp
from jax.experimental import pallas as pl
from jax.experimental.pallas import tpu as pltpu


# ----------------------------------------------------------------------------
# Parameter setup (matches the PyTorch __init__ buffer `pe`)
# ----------------------------------------------------------------------------
def make_positional_encoding_table(d_model: int, max_len: int = 2000) -> jnp.ndarray:
    position = jnp.arange(max_len, dtype=jnp.float32)[:, None]            # [max_len, 1]
    div_term = jnp.exp(
        jnp.arange(0, d_model, 2, dtype=jnp.float32) * (-math.log(10000.0) / d_model)
    )                                                                      # [d_model/2]
    angles = position * div_term                                           # [max_len, d_model/2]
    pe = jnp.zeros((max_len, d_model), dtype=jnp.float32)
    pe = pe.at[:, 0::2].set(jnp.sin(angles))
    pe = pe.at[:, 1::2].set(jnp.cos(angles))
    return pe                                                              # [max_len, d_model]


# ----------------------------------------------------------------------------
# Kernels (operate on lane-dense flattened [B, S*D] blocks)
# ----------------------------------------------------------------------------
def _pe_add_kernel(x_ref, pe_ref, o_ref):
    # x_ref: (B, T), pe_ref: (1, T) -> broadcast add over the batch rows.
    o_ref[...] = x_ref[...] + pe_ref[...]


def _pe_add_dropout_kernel(x_ref, pe_ref, bits_ref, o_ref, *, threshold, scale):
    # Inverted dropout: keep iff uniform-int32 bits >= threshold (integer
    # compare, no int->float convert), scale kept values by 1/(1-p).
    y = x_ref[...] + pe_ref[...]
    keep = bits_ref[...] >= threshold
    o_ref[...] = jnp.where(keep, y * scale, 0.0).astype(o_ref.dtype)


# ----------------------------------------------------------------------------
# Wrapper
# ----------------------------------------------------------------------------
def _pick_col_tile(cols: int, rows: int, elem_bytes: int,
                   target_bytes: int = 2 << 20) -> int:
    """Largest column tile that is a multiple of 128, divides `cols`, and keeps
    a (rows, tile) block under ~target_bytes. Falls back to the full width
    (always a legal block) when cols is not a multiple of 128."""
    if cols % 128 != 0:
        return cols
    t = cols
    while rows * t * elem_bytes > target_bytes and t % 256 == 0:
        t //= 2
    return t


def positional_encoding_forward(x, pe_table, *, p: float = 0.1,
                                training: bool = False, rng_key=None,
                                donate_x: bool = False):
    """x: [B, S, D]. Returns x + pe[:S] (with inverted dropout if training)."""
    B, S, D = x.shape
    if training and p >= 1.0:
        return jnp.zeros_like(x)

    cols = S * D
    x2 = x.reshape(B, cols)                                   # lane-dense layout
    pe2 = pe_table[:S].astype(x.dtype).reshape(1, cols)       # cast once, match x dtype

    elem_bytes = jnp.dtype(x.dtype).itemsize
    T = _pick_col_tile(cols, B, elem_bytes)
    grid = (cols // T,)

    x_spec = pl.BlockSpec((B, T), lambda j: (0, j))
    pe_spec = pl.BlockSpec((1, T), lambda j: (0, j))
    out_spec = pl.BlockSpec((B, T), lambda j: (0, j))
    compiler_params = pltpu.CompilerParams(
        dimension_semantics=("parallel",),
        vmem_limit_bytes=32 * 1024 * 1024,   # safe on v5e/v6e/v7x; blocks are ~2 MiB
    )
    out_shape = jax.ShapeDtypeStruct((B, cols), x.dtype)
    aliases = {0: 0} if donate_x else {}

    if (not training) or p <= 0.0:
        out2 = pl.pallas_call(
            _pe_add_kernel,
            out_shape=out_shape,
            grid=grid,
            in_specs=[x_spec, pe_spec],
            out_specs=out_spec,
            compiler_params=compiler_params,
            input_output_aliases=aliases,
        )(x2, pe2)
        return out2.reshape(B, S, D)

    # ---- training mode: dropout with portable, deterministic random bits ----
    if rng_key is None:
        rng_key = jax.random.PRNGKey(0)
    bits_u32 = jax.random.bits(rng_key, (B, cols), dtype=jnp.uint32)
    bits_i32 = jax.lax.bitcast_convert_type(bits_u32, jnp.int32)   # uniform over int32

    # keep iff bits_i32 >= threshold_i32  <=>  P(keep) = 1 - p  (2^-32 quantization)
    threshold_u32 = min(int(round(p * 4294967296.0)), 4294967295)
    threshold_i32 = threshold_u32 - 2147483648
    scale = 1.0 / (1.0 - p)

    out2 = pl.pallas_call(
        functools.partial(_pe_add_dropout_kernel,
                          threshold=threshold_i32, scale=scale),
        out_shape=out_shape,
        grid=grid,
        in_specs=[x_spec, pe_spec, x_spec],   # bits share x's blocking
        out_specs=out_spec,
        compiler_params=compiler_params,
        input_output_aliases=aliases,
    )(x2, pe2, bits_i32)
    return out2.reshape(B, S, D)


# ----------------------------------------------------------------------------
# Main
# ----------------------------------------------------------------------------
if __name__ == "__main__":
    d_model = 32
    max_len = 2000
    B, S = 2, 8

    key = jax.random.PRNGKey(0)
    x = jax.random.normal(key, (B, S, d_model), dtype=jnp.float32)
    pe_table = make_positional_encoding_table(d_model, max_len)

    ref = x + pe_table[None, :S, :]

    # Eval-mode forward (dropout is identity): exact-match check.
    out_eval = jax.block_until_ready(
        positional_encoding_forward(x, pe_table, p=0.1, training=False))
    assert out_eval.shape == (B, S, d_model)
    assert jnp.allclose(out_eval, ref, atol=1e-6), "eval-mode mismatch"

    # Training-mode forward (deterministic given the key).
    p = 0.1
    out_train = jax.block_until_ready(
        positional_encoding_forward(x, pe_table, p=p, training=True,
                                    rng_key=jax.random.PRNGKey(1234)))
    assert out_train.shape == (B, S, d_model)
    scaled = ref / (1.0 - p)
    is_dropped = jnp.isclose(out_train, 0.0, atol=1e-6)
    is_kept = jnp.isclose(out_train, scaled, rtol=1e-5, atol=1e-5)
    assert bool(jnp.all(is_dropped | is_kept)), "train-mode element mismatch"
    assert bool(jnp.any(is_kept)), "dropout dropped everything (unexpected)"

    print("KERNEL_OK")
</pallas_src>

<mosaic_0001>
module attributes {stable_mosaic.version = 11 : i64} {
  func.func @_pe_add_kernel(%arg0: i32, %arg1: memref<2x256xf32, #tpu.memory_space<vmem>>, %arg2: memref<1x256xf32, #tpu.memory_space<vmem>>, %arg3: memref<2x256xf32, #tpu.memory_space<vmem>>) attributes {dimension_semantics = [#tpu.dimension_semantics<parallel>], iteration_bounds = array<i64: 1>, scalar_prefetch = 0 : i64, scratch_operands = 0 : i64, tpu.core_type = #tpu.core_type<tc>, window_params = [{transform_indices = @transform_0, window_bounds = array<i64: 2, 256>}, {transform_indices = @transform_1, window_bounds = array<i64: 1, 256>}, {transform_indices = @transform_2, window_bounds = array<i64: 2, 256>}]} {
    %c0 = arith.constant 0 : index
    %c0_0 = arith.constant 0 : index
    %0 = vector.load %arg1[%c0, %c0_0] : memref<2x256xf32, #tpu.memory_space<vmem>>, vector<2x256xf32>
    %c0_1 = arith.constant 0 : index
    %c0_2 = arith.constant 0 : index
    %1 = vector.load %arg2[%c0_1, %c0_2] : memref<1x256xf32, #tpu.memory_space<vmem>>, vector<1x256xf32>
    %2 = vector.broadcast %1 : vector<1x256xf32> to vector<2x256xf32>
    %3 = arith.addf %0, %2 : vector<2x256xf32>
    %c0_3 = arith.constant 0 : index
    %c0_4 = arith.constant 0 : index
    %4 = vector.load %arg3[%c0_3, %c0_4] : memref<2x256xf32, #tpu.memory_space<vmem>>, vector<2x256xf32>
    tpu.vector_store %arg3[%c0_3, %c0_4], %3 {strides = array<i32>} : memref<2x256xf32, #tpu.memory_space<vmem>>, vector<2x256xf32>,
    return
  }
  func.func @transform_0(%arg0: i32) -> (i32, i32) {
    %c0_i32 = arith.constant 0 : i32
    %c0_i32_0 = arith.constant 0 : i32
    return %c0_i32, %arg0 : i32, i32
  }
  func.func @transform_1(%arg0: i32) -> (i32, i32) {
    %c0_i32 = arith.constant 0 : i32
    %c0_i32_0 = arith.constant 0 : i32
    return %c0_i32, %arg0 : i32, i32
  }
  func.func @transform_2(%arg0: i32) -> (i32, i32) {
    %c0_i32 = arith.constant 0 : i32
    %c0_i32_0 = arith.constant 0 : i32
    return %c0_i32, %arg0 : i32, i32
  }
}

</mosaic_0001>

<bundles_post_ra>
// kernel: tpu_custom_call.1
= control target key start
LH: loop header
LB: loop body
LE: loop exit
PB: predicated region body
PF: predicated region fallthrough
CT: control target
= control target key end

     0   :  { %7 = vsyncpa [#allocation3], 0  ;;  %s177_s0 = inlined_call_operand.hbm [shape: f32[2,256], index: 0, kind: input, shape index: {}]   ;;  %s178_s1 = inlined_call_operand.hbm [shape: f32[1,256], index: 1, kind: input, shape index: {}]   ;;  %s179_s2 = inlined_call_operand.hbm [shape: f32[2,256], index: 2, kind: output, shape index: {}]  }
   0x1   :  { %8 = vsyncpa [#allocation6], 0 }
   0x2   :  { %9 = vsyncpa [#allocation4], 0  ;;  %s15_s11 = sshll.u32 %s177_s0, 4  ;;  %s150_s12 = smov [#allocation2]   ;;  %s16_s11 = int_to_ptr.hbm [resolvable:$true] %s15_s11 }
   0x3   :  { %s17_s13 = sshll.u32 %s150_s12, 4  ;;  %s26_s16 = sshll.u32 %s178_s1, 4  ;;  %s18_s13 = int_to_ptr.vmem [resolvable:$true] %s17_s13  ;;  %s27_s16 = int_to_ptr.hbm [resolvable:$true] %s26_s16 }
   0x4   :  { %20 = dma.hbm_to_vmem [thread:$0]  %s16_s11, 64, %s18_s13, [#allocation3]  }
   0x5   :  { %s151_s17 = smov [#allocation5]  }
   0x6   :  { %s28_s18 = sshll.u32 %s151_s17, 4  ;;  %s29_s18 = int_to_ptr.vmem [resolvable:$true] %s28_s18 }
   0x7   :  { %31 = dma.hbm_to_vmem [thread:$0]  %s27_s16, 32, %s29_s18, [#allocation6]  }
   0x8   :  { %144 = dma.done.wait [#allocation3], 64  }
   0x9   :  { %145 = vsyncadd [#allocation3], 4294967232 }
   0xa   :  { %146 = dma.done.wait [#allocation6], 32  }
   0xb   :  { %147 = vsyncadd [#allocation6], 4294967264  ;;  %v41_v0 = vld [vmem:[#allocation5] sm:$0x3]  ;;  %vm46_vm0 = vcmask 1041408   ;;  %s152_s0 = smov [#allocation7]  }
   0xc   :  { %v43_v1 = vperm.slane %v41_v0, 0  ;;  %v44_v2 = vperm.slane %v41_v0, 1  ;;  %v40_v3 = vld [vmem:[#allocation2] sm:$0xf]  ;;  %s56_s19 = sshll.u32 %s152_s0, 4  ;;  %s58_s21 = sshll.u32 %s179_s2, 4  ;;  %s57_s19 = int_to_ptr.vmem [resolvable:$true] %s56_s19  ;;  %s59_s21 = int_to_ptr.hbm [resolvable:$true] %s58_s21 }
   0xe   :  { %v45_v4 = vrot.slane %v44_v2, 6 }
  0x10   :  { %v47_v5 = vsel %vm46_vm0, %v43_v1, %v45_v4 }
  0x11   :  { %v49_v6 = vadd.f32 %v47_v5, %v40_v3 }
  0x13   :  { %50 = vst [vmem:[#allocation7] sm:$0xf] %v49_v6 }
  0x14   :  { %61 = dma.vmem_to_hbm [thread:$0]  %s57_s19, 64, %s59_s21, [#allocation4]  }
  0x15   :  { %148 = dma.done.wait [#allocation4], 64  }
  0x16   :  { %149 = vsyncadd [#allocation4], 4294967232 }
  0x17   :  { %66 = vsyncpa [#allocation3], 1 }
  0x18   :  { %67 = vsyncpa [#allocation6], 1 }
  0x19   :  { %68 = vsyncpa [#allocation4], 1 }

</bundles_post_ra>
